<compile_context>
chip_gen: v7x
topology: tpu7x:2x2x1
jax: 0.10.0
libtpu: 0.0.40
codegen_flags: <defaults>
</compile_context>

<pallas_src>
import functools

import jax
import jax.numpy as jnp
from jax.experimental import pallas as pl
from jax.experimental.pallas import tpu as pltpu


LN_EPS = 1e-5  # torch.nn.LayerNorm default


def _round_up(x, m):
    return ((x + m - 1) // m) * m


def _layernorm_fm(h, gamma_col, beta_col):
    """Feature-major LayerNorm: h is (H, N), normalize over axis 0 (features).

    Single-pass statistics (var = E[x^2] - mean^2); the two sublane reductions
    are independent so they pipeline.  All math in f32.
    """
    inv_h = 1.0 / h.shape[0]
    s1 = jnp.sum(h, axis=0, keepdims=True)          # (1, N)
    s2 = jnp.sum(h * h, axis=0, keepdims=True)      # (1, N)  independent of s1
    mean = s1 * inv_h
    var = jnp.maximum(s2 * inv_h - mean * mean, 0.0)
    inv = jax.lax.rsqrt(var + LN_EPS)
    return (h - mean) * inv * gamma_col + beta_col


def dense_dqn_kernel(ob_ref, w1_ref, w2_ref, wq_ref, vec_ref, qt_ref):
    """One batch tile: ob (tile_b, ob_dim) -> q^T (ac_dim, tile_b), feature-major."""
    ac_dim = qt_ref.shape[0]

    # In-kernel cast (hides under the obs DMA); no wrapper-side HBM copy.
    x = ob_ref[...].astype(w1_ref.dtype)            # (tile_b, ob_dim)

    vecs = vec_ref[...]                             # (H, 8) f32, single packed DMA
    b1, g1, be1 = vecs[:, 0:1], vecs[:, 1:2], vecs[:, 2:3]   # (H, 1) columns
    b2, g2, be2 = vecs[:, 3:4], vecs[:, 4:5], vecs[:, 5:6]
    bq_col = vecs[0:ac_dim, 6:7]                    # (ac_dim, 1)

    # fc_1 -> ln_1 -> relu :  h1^T = W1 @ x^T   (contract last dims, q@k^T style)
    h1 = jax.lax.dot_general(
        w1_ref[...], x, (((1,), (1,)), ((), ())),
        preferred_element_type=jnp.float32) + b1    # (H, tile_b)
    h1 = jnp.maximum(_layernorm_fm(h1, g1, be1), 0.0)

    # fc_2 -> ln_2 -> relu :  h2^T = W2 @ h1^T
    h2 = jax.lax.dot_general(
        w2_ref[...], h1.astype(w2_ref.dtype), (((1,), (0,)), ((), ())),
        preferred_element_type=jnp.float32) + b2    # (H, tile_b)
    h2 = jnp.maximum(_layernorm_fm(h2, g2, be2), 0.0)

    # q_head :  q^T = Wq @ h2^T  (lane-dense store, full 128-lane vst)
    qt = jax.lax.dot_general(
        wq_ref[...], h2.astype(wq_ref.dtype), (((1,), (0,)), ((), ())),
        preferred_element_type=jnp.float32) + bq_col
    qt_ref[...] = qt.astype(qt_ref.dtype)


@functools.partial(jax.jit, static_argnames=("block_b", "use_bf16"))
def dense_dqn_forward(ob, params, *, block_b=2048, use_bf16=True):
    """ob: (B, ob_dim) f32.  params: w1 (H, ob_dim), w2 (H, H), wq (ac_dim, H)
    in native PyTorch (out, in) layout, and vecs (H, 8) packed column-wise
    [b1, g1, be1, b2, g2, be2, bq@rows0..ac_dim-1 of col 6, unused]."""
    B, ob_dim = ob.shape
    ac_dim = params["wq"].shape[0]

    granule = 128
    tile_b = max(granule, (block_b // granule) * granule)
    # Guarantee >= 2 grid steps when the batch allows, so the "parallel" batch
    # axis shards across v7x's 2 TensorCores (harmless no-op on v5e/v6e).
    tile_b = min(tile_b, _round_up(-(-B // 2), granule))
    B_pad = _round_up(B, tile_b)
    num_steps = B_pad // tile_b

    mm_dtype = jnp.bfloat16 if use_bf16 else jnp.float32
    # Obs stay f32 in HBM; pad only if the batch is ragged w.r.t. tile_b.
    ob_p = ob if B_pad == B else jnp.pad(ob, ((0, B_pad - B), (0, 0)))
    w1 = params["w1"].astype(mm_dtype)        # (H, ob_dim)
    w2 = params["w2"].astype(mm_dtype)        # (H, H)
    wq = params["wq"].astype(mm_dtype)        # (ac_dim, H)
    vecs = params["vecs"].astype(jnp.float32)  # (H, 8)

    qt = pl.pallas_call(
        dense_dqn_kernel,
        out_shape=jax.ShapeDtypeStruct((ac_dim, B_pad), jnp.float32),
        grid=(num_steps,),
        in_specs=[
            pl.BlockSpec((tile_b, ob_dim), lambda i: (i, 0)),   # obs: tiled over batch
            pl.BlockSpec(w1.shape, lambda i: (0, 0)),           # weights VMEM-resident
            pl.BlockSpec(w2.shape, lambda i: (0, 0)),
            pl.BlockSpec(wq.shape, lambda i: (0, 0)),
            pl.BlockSpec(vecs.shape, lambda i: (0, 0)),         # one packed param DMA
        ],
        out_specs=pl.BlockSpec((ac_dim, tile_b), lambda i: (0, i)),
        compiler_params=pltpu.CompilerParams(
            dimension_semantics=("parallel",)),
    )(ob_p, w1, w2, wq, vecs)

    # Layout plumbing only: slice off padding and un-transpose (one fused XLA op).
    return qt[:, :B].T


# ----------------------------- parameter helpers -----------------------------

def _orthogonal(key, rows, cols, gain):
    """Deterministic orthogonal init (same spirit as nn.init.orthogonal_)."""
    n = max(rows, cols)
    a = jax.random.normal(key, (n, n), dtype=jnp.float32)
    q, r = jnp.linalg.qr(a)
    q = q * jnp.sign(jnp.diag(r))[None, :]
    return gain * q[:rows, :cols]


def pack_vectors(*, b1, g1, be1, b2, g2, be2, bq):
    """Pack the 7 small 1-D params into one (hidden, 8) f32 array, column-wise.

    Columns 0..5 : b1, g1, be1, b2, g2, be2  (each length `hidden`)
    Column  6    : bq in rows 0..ac_dim-1    (requires ac_dim <= hidden)
    """
    hidden = b1.shape[0]
    ac_dim = bq.shape[0]
    vecs = jnp.zeros((hidden, 8), jnp.float32)
    for c, v in enumerate((b1, g1, be1, b2, g2, be2)):
        vecs = vecs.at[:, c].set(v.astype(jnp.float32))
    vecs = vecs.at[:ac_dim, 6].set(bq.astype(jnp.float32))
    return vecs


def init_params(key, ob_dim, ac_dim, hidden_size=64):
    k1, k2, k3 = jax.random.split(key, 3)
    relu_gain = float(jnp.sqrt(2.0))   # nn.init.calculate_gain('relu')
    lin_gain = 1.0                     # nn.init.calculate_gain('linear')

    # Weights kept in PyTorch's native (out, in) layout — exactly what the
    # feature-major kernel consumes.
    w1 = _orthogonal(k1, hidden_size, ob_dim, relu_gain)       # (hidden, ob_dim)
    w2 = _orthogonal(k2, hidden_size, hidden_size, relu_gain)  # (hidden, hidden)
    wq = _orthogonal(k3, ac_dim, hidden_size, lin_gain)        # (ac_dim, hidden)

    vecs = pack_vectors(
        b1=jnp.zeros(hidden_size), g1=jnp.ones(hidden_size), be1=jnp.zeros(hidden_size),
        b2=jnp.zeros(hidden_size), g2=jnp.ones(hidden_size), be2=jnp.zeros(hidden_size),
        bq=jnp.zeros(ac_dim),
    )
    return {"w1": w1, "w2": w2, "wq": wq, "vecs": vecs}


# ------------------------------- pure-JAX reference -------------------------------

def reference_forward(ob, params, *, use_bf16):
    vecs = params["vecs"]
    ac_dim = params["wq"].shape[0]
    b1, g1, be1, b2, g2, be2 = (vecs[:, i] for i in range(6))
    bq = vecs[:ac_dim, 6]

    if use_bf16:
        def mm(x, w):
            return jnp.dot(x.astype(jnp.bfloat16), w.astype(jnp.bfloat16),
                           preferred_element_type=jnp.float32)
    else:
        def mm(x, w):
            return jnp.dot(x, w, preferred_element_type=jnp.float32)

    def ln(h, g, b):
        mean = jnp.mean(h, axis=-1, keepdims=True)
        c = h - mean
        var = jnp.mean(c * c, axis=-1, keepdims=True)
        return c * jax.lax.rsqrt(var + LN_EPS) * g + b

    h1 = jnp.maximum(ln(mm(ob, params["w1"].T) + b1, g1, be1), 0.0)
    h2 = jnp.maximum(ln(mm(h1, params["w2"].T) + b2, g2, be2), 0.0)
    return mm(h2, params["wq"].T) + bq


if __name__ == "__main__":
    key = jax.random.PRNGKey(0)
    k_param, k_ob, k_vec = jax.random.split(key, 3)

    ob_dim, ac_dim, hidden = 16, 4, 64
    params = init_params(k_param, ob_dim, ac_dim, hidden)

    # The module's init leaves biases at 0 and LN affine at (1, 0); perturb them so
    # the bias / LayerNorm-affine code paths are actually exercised by the check.
    kv = jax.random.split(k_vec, 7)
    params["vecs"] = pack_vectors(
        b1=0.1 * jax.random.normal(kv[0], (hidden,)),
        g1=1.0 + 0.1 * jax.random.normal(kv[1], (hidden,)),
        be1=0.1 * jax.random.normal(kv[2], (hidden,)),
        b2=0.1 * jax.random.normal(kv[3], (hidden,)),
        g2=1.0 + 0.1 * jax.random.normal(kv[4], (hidden,)),
        be2=0.1 * jax.random.normal(kv[5], (hidden,)),
        bq=0.1 * jax.random.normal(kv[6], (ac_dim,)),
    )

    # 1) f32 matmul path, ragged batch (exercises the pad branch), single grid step.
    batch_small = 40
    ob_small = jax.random.normal(k_ob, (batch_small, ob_dim), dtype=jnp.float32)
    q32 = dense_dqn_forward(ob_small, params, use_bf16=False)
    jax.block_until_ready(q32)
    q32_ref = reference_forward(ob_small, params, use_bf16=False)
    assert q32.shape == (batch_small, ac_dim)
    assert bool(jnp.allclose(q32, q32_ref, atol=3e-4, rtol=3e-4))

    # 2) bf16 matmul path, multi-step pipelined grid (4 batch tiles of 128 rows).
    batch_big = 512
    ob_big = jax.random.normal(k_ob, (batch_big, ob_dim), dtype=jnp.float32)
    q16 = dense_dqn_forward(ob_big, params, block_b=128, use_bf16=True)
    jax.block_until_ready(q16)
    q16_ref = reference_forward(ob_big, params, use_bf16=True)
    assert q16.shape == (batch_big, ac_dim)
    assert bool(jnp.allclose(q16, q16_ref, atol=2e-2, rtol=2e-2))

    # 3) default block_b path: tile_b capped at ceil(B/2) -> exactly 2 grid steps
    #    (both v7x TensorCores get work).
    q16b = dense_dqn_forward(ob_big, params, use_bf16=True)
    jax.block_until_ready(q16b)
    assert q16b.shape == (batch_big, ac_dim)
    assert bool(jnp.allclose(q16b, q16_ref, atol=2e-2, rtol=2e-2))

    print("KERNEL_OK")
</pallas_src>

<mosaic_0001>
module attributes {stable_mosaic.version = 11 : i64} {
  func.func @dense_dqn_kernel(%arg0: i32, %arg1: memref<128x16xf32, #tpu.memory_space<vmem>>, %arg2: memref<64x16xf32, #tpu.memory_space<vmem>>, %arg3: memref<64x64xf32, #tpu.memory_space<vmem>>, %arg4: memref<4x64xf32, #tpu.memory_space<vmem>>, %arg5: memref<64x8xf32, #tpu.memory_space<vmem>>, %arg6: memref<4x128xf32, #tpu.memory_space<vmem>>) attributes {dimension_semantics = [#tpu.dimension_semantics<parallel>], iteration_bounds = array<i64: 1>, scalar_prefetch = 0 : i64, scratch_operands = 0 : i64, tpu.core_type = #tpu.core_type<tc>, window_params = [{transform_indices = @transform_0, window_bounds = array<i64: 128, 16>}, {pipeline_mode = #tpu.pipeline_mode<synchronous>, transform_indices = @transform_1, window_bounds = array<i64: 64, 16>}, {pipeline_mode = #tpu.pipeline_mode<synchronous>, transform_indices = @transform_2, window_bounds = array<i64: 64, 64>}, {pipeline_mode = #tpu.pipeline_mode<synchronous>, transform_indices = @transform_3, window_bounds = array<i64: 4, 64>}, {pipeline_mode = #tpu.pipeline_mode<synchronous>, transform_indices = @transform_4, window_bounds = array<i64: 64, 8>}, {transform_indices = @transform_5, window_bounds = array<i64: 4, 128>}]} {
    %c0 = arith.constant 0 : index
    %c0_0 = arith.constant 0 : index
    %0 = vector.load %arg1[%c0, %c0_0] : memref<128x16xf32, #tpu.memory_space<vmem>>, vector<128x16xf32>
    %c0_1 = arith.constant 0 : index
    %c0_2 = arith.constant 0 : index
    %1 = vector.load %arg5[%c0_1, %c0_2] : memref<64x8xf32, #tpu.memory_space<vmem>>, vector<64x8xf32>
    %2 = vector.extract_strided_slice %1 {offsets = [0, 0], sizes = [64, 1], strides = [1, 1]} : vector<64x8xf32> to vector<64x1xf32>
    %3 = vector.extract_strided_slice %1 {offsets = [0, 1], sizes = [64, 1], strides = [1, 1]} : vector<64x8xf32> to vector<64x1xf32>
    %4 = vector.extract_strided_slice %1 {offsets = [0, 2], sizes = [64, 1], strides = [1, 1]} : vector<64x8xf32> to vector<64x1xf32>
    %5 = vector.extract_strided_slice %1 {offsets = [0, 3], sizes = [64, 1], strides = [1, 1]} : vector<64x8xf32> to vector<64x1xf32>
    %6 = vector.extract_strided_slice %1 {offsets = [0, 4], sizes = [64, 1], strides = [1, 1]} : vector<64x8xf32> to vector<64x1xf32>
    %7 = vector.extract_strided_slice %1 {offsets = [0, 5], sizes = [64, 1], strides = [1, 1]} : vector<64x8xf32> to vector<64x1xf32>
    %8 = vector.extract_strided_slice %1 {offsets = [0, 6], sizes = [4, 1], strides = [1, 1]} : vector<64x8xf32> to vector<4x1xf32>
    %c0_3 = arith.constant 0 : index
    %c0_4 = arith.constant 0 : index
    %9 = vector.load %arg2[%c0_3, %c0_4] : memref<64x16xf32, #tpu.memory_space<vmem>>, vector<64x16xf32>
    %cst = arith.constant dense<0.000000e+00> : vector<64x128xf32>
    %10 = tpu.matmul %9, %0, %cst {dimension_numbers = #tpu.dot_dimension_numbers<[1], [1], [0], [0], [0, 0, 1, 0], [], []>} : vector<64x16xf32>, vector<128x16xf32>, vector<64x128xf32> -> vector<64x128xf32>
    %11 = vector.broadcast %2 : vector<64x1xf32> to vector<64x128xf32>
    %12 = arith.addf %10, %11 : vector<64x128xf32>
    %cst_5 = arith.constant dense<0.000000e+00> : vector<128xf32>
    %13 = vector.multi_reduction <add>, %12, %cst_5 [0] : vector<64x128xf32> to vector<128xf32>
    %14 = vector.shape_cast %13 : vector<128xf32> to vector<1x128xf32>
    %15 = arith.mulf %12, %12 : vector<64x128xf32>
    %cst_6 = arith.constant dense<0.000000e+00> : vector<128xf32>
    %16 = vector.multi_reduction <add>, %15, %cst_6 [0] : vector<64x128xf32> to vector<128xf32>
    %17 = vector.shape_cast %16 : vector<128xf32> to vector<1x128xf32>
    %cst_7 = arith.constant 1.562500e-02 : f32
    %18 = vector.broadcast %cst_7 : f32 to vector<1x128xf32>
    %19 = arith.mulf %14, %18 : vector<1x128xf32>
    %cst_8 = arith.constant 1.562500e-02 : f32
    %20 = vector.broadcast %cst_8 : f32 to vector<1x128xf32>
    %21 = arith.mulf %17, %20 : vector<1x128xf32>
    %22 = arith.mulf %19, %19 : vector<1x128xf32>
    %23 = arith.subf %21, %22 : vector<1x128xf32>
    %cst_9 = arith.constant 0.000000e+00 : f32
    %24 = vector.broadcast %cst_9 : f32 to vector<1x128xf32>
    %25 = arith.maximumf %23, %24 : vector<1x128xf32>
    %cst_10 = arith.constant 9.99999974E-6 : f32
    %26 = vector.broadcast %cst_10 : f32 to vector<1x128xf32>
    %27 = arith.addf %25, %26 : vector<1x128xf32>
    %28 = math.rsqrt %27 : vector<1x128xf32>
    %29 = vector.broadcast %19 : vector<1x128xf32> to vector<64x128xf32>
    %30 = arith.subf %12, %29 : vector<64x128xf32>
    %31 = vector.broadcast %28 : vector<1x128xf32> to vector<64x128xf32>
    %32 = arith.mulf %30, %31 : vector<64x128xf32>
    %33 = vector.broadcast %3 : vector<64x1xf32> to vector<64x128xf32>
    %34 = arith.mulf %32, %33 : vector<64x128xf32>
    %35 = vector.broadcast %4 : vector<64x1xf32> to vector<64x128xf32>
    %36 = arith.addf %34, %35 : vector<64x128xf32>
    %cst_11 = arith.constant 0.000000e+00 : f32
    %37 = vector.broadcast %cst_11 : f32 to vector<64x128xf32>
    %38 = arith.maximumf %36, %37 : vector<64x128xf32>
    %c0_12 = arith.constant 0 : index
    %c0_13 = arith.constant 0 : index
    %39 = vector.load %arg3[%c0_12, %c0_13] : memref<64x64xf32, #tpu.memory_space<vmem>>, vector<64x64xf32>
    %cst_14 = arith.constant dense<0.000000e+00> : vector<64x128xf32>
    %40 = tpu.matmul %39, %38, %cst_14 {dimension_numbers = #tpu.dot_dimension_numbers<[1], [0], [0], [1], [0, 0, 1, 1], [], []>} : vector<64x64xf32>, vector<64x128xf32>, vector<64x128xf32> -> vector<64x128xf32>
    %41 = vector.broadcast %5 : vector<64x1xf32> to vector<64x128xf32>
    %42 = arith.addf %40, %41 : vector<64x128xf32>
    %cst_15 = arith.constant dense<0.000000e+00> : vector<128xf32>
    %43 = vector.multi_reduction <add>, %42, %cst_15 [0] : vector<64x128xf32> to vector<128xf32>
    %44 = vector.shape_cast %43 : vector<128xf32> to vector<1x128xf32>
    %45 = arith.mulf %42, %42 : vector<64x128xf32>
    %cst_16 = arith.constant dense<0.000000e+00> : vector<128xf32>
    %46 = vector.multi_reduction <add>, %45, %cst_16 [0] : vector<64x128xf32> to vector<128xf32>
    %47 = vector.shape_cast %46 : vector<128xf32> to vector<1x128xf32>
    %cst_17 = arith.constant 1.562500e-02 : f32
    %48 = vector.broadcast %cst_17 : f32 to vector<1x128xf32>
    %49 = arith.mulf %44, %48 : vector<1x128xf32>
    %cst_18 = arith.constant 1.562500e-02 : f32
    %50 = vector.broadcast %cst_18 : f32 to vector<1x128xf32>
    %51 = arith.mulf %47, %50 : vector<1x128xf32>
    %52 = arith.mulf %49, %49 : vector<1x128xf32>
    %53 = arith.subf %51, %52 : vector<1x128xf32>
    %cst_19 = arith.constant 0.000000e+00 : f32
    %54 = vector.broadcast %cst_19 : f32 to vector<1x128xf32>
    %55 = arith.maximumf %53, %54 : vector<1x128xf32>
    %cst_20 = arith.constant 9.99999974E-6 : f32
    %56 = vector.broadcast %cst_20 : f32 to vector<1x128xf32>
    %57 = arith.addf %55, %56 : vector<1x128xf32>
    %58 = math.rsqrt %57 : vector<1x128xf32>
    %59 = vector.broadcast %49 : vector<1x128xf32> to vector<64x128xf32>
    %60 = arith.subf %42, %59 : vector<64x128xf32>
    %61 = vector.broadcast %58 : vector<1x128xf32> to vector<64x128xf32>
    %62 = arith.mulf %60, %61 : vector<64x128xf32>
    %63 = vector.broadcast %6 : vector<64x1xf32> to vector<64x128xf32>
    %64 = arith.mulf %62, %63 : vector<64x128xf32>
    %65 = vector.broadcast %7 : vector<64x1xf32> to vector<64x128xf32>
    %66 = arith.addf %64, %65 : vector<64x128xf32>
    %cst_21 = arith.constant 0.000000e+00 : f32
    %67 = vector.broadcast %cst_21 : f32 to vector<64x128xf32>
    %68 = arith.maximumf %66, %67 : vector<64x128xf32>
    %c0_22 = arith.constant 0 : index
    %c0_23 = arith.constant 0 : index
    %69 = vector.load %arg4[%c0_22, %c0_23] : memref<4x64xf32, #tpu.memory_space<vmem>>, vector<4x64xf32>
    %cst_24 = arith.constant dense<0.000000e+00> : vector<4x128xf32>
    %70 = tpu.matmul %69, %68, %cst_24 {dimension_numbers = #tpu.dot_dimension_numbers<[1], [0], [0], [1], [0, 0, 1, 1], [], []>} : vector<4x64xf32>, vector<64x128xf32>, vector<4x128xf32> -> vector<4x128xf32>
    %71 = vector.broadcast %8 : vector<4x1xf32> to vector<4x128xf32>
    %72 = arith.addf %70, %71 : vector<4x128xf32>
    %c0_25 = arith.constant 0 : index
    %c0_26 = arith.constant 0 : index
    %73 = vector.load %arg6[%c0_25, %c0_26] : memref<4x128xf32, #tpu.memory_space<vmem>>, vector<4x128xf32>
    tpu.vector_store %arg6[%c0_25, %c0_26], %72 {strides = array<i32>} : memref<4x128xf32, #tpu.memory_space<vmem>>, vector<4x128xf32>,
    return
  }
  func.func @transform_0(%arg0: i32) -> (i32, i32) {
    %c0_i32 = arith.constant 0 : i32
    %c0_i32_0 = arith.constant 0 : i32
    return %arg0, %c0_i32 : i32, i32
  }
  func.func @transform_1(%arg0: i32) -> (i32, i32) {
    %c0_i32 = arith.constant 0 : i32
    %c0_i32_0 = arith.constant 0 : i32
    %c0_i32_1 = arith.constant 0 : i32
    return %c0_i32, %c0_i32_0 : i32, i32
  }
  func.func @transform_2(%arg0: i32) -> (i32, i32) {
    %c0_i32 = arith.constant 0 : i32
    %c0_i32_0 = arith.constant 0 : i32
    %c0_i32_1 = arith.constant 0 : i32
    return %c0_i32, %c0_i32_0 : i32, i32
  }
  func.func @transform_3(%arg0: i32) -> (i32, i32) {
    %c0_i32 = arith.constant 0 : i32
    %c0_i32_0 = arith.constant 0 : i32
    %c0_i32_1 = arith.constant 0 : i32
    return %c0_i32, %c0_i32_0 : i32, i32
  }
  func.func @transform_4(%arg0: i32) -> (i32, i32) {
    %c0_i32 = arith.constant 0 : i32
    %c0_i32_0 = arith.constant 0 : i32
    %c0_i32_1 = arith.constant 0 : i32
    return %c0_i32, %c0_i32_0 : i32, i32
  }
  func.func @transform_5(%arg0: i32) -> (i32, i32) {
    %c0_i32 = arith.constant 0 : i32
    %c0_i32_0 = arith.constant 0 : i32
    return %c0_i32, %arg0 : i32, i32
  }
}

</mosaic_0001>

<bundles_post_ra>
// kernel: dense_dqn_forward.1
= control target key start
LH: loop header
LB: loop body
LE: loop exit
PB: predicated region body
PF: predicated region fallthrough
CT: control target
= control target key end

     0   :  { %vm92_vm0 = vcmask 130048   ;;  %v1103_v3 = vmov 0   ;;  %v1104_v26 = vmov 1   ;;  %v1105_v29 = vmov 2   ;;  %s1494_s0 = inlined_call_operand.vmem [shape: f32[128,16], index: 0, kind: input, shape index: {}]   ;;  %s1495_s1 = inlined_call_operand.vmem [shape: f32[64,16], index: 1, kind: input, shape index: {}]   ;;  %s1496_s4 = inlined_call_operand.vmem [shape: f32[64,8], index: 4, kind: input, shape index: {}]   ;;  %s1497_s2 = inlined_call_operand.vmem [shape: f32[64,64], index: 2, kind: input, shape index: {}]   ;;  %s1498_s3 = inlined_call_operand.vmem [shape: f32[4,64], index: 3, kind: input, shape index: {}]   ;;  %s1499_s5 = inlined_call_operand.vmem [shape: f32[4,128], index: 5, kind: output, shape index: {}]  }
   0x1   :  { %v20_v0 = vld [vmem:[%s1494_s0] sm:$0xff]  ;;  %v21_v1 = vld [vmem:[%s1494_s0 + $0x8] sm:$0xff]  ;;  %vm1151_vm1 = vmpackc.low %vm92_vm0, %vm92_vm0  ;;  %1072 = vset.pattern.permute.xlu0 %v1103_v3  ;;  %1073 = vset.pattern.permute.xlu1 %v1103_v3  ;;  %vm455_vm2 = vcmask 523264   ;;  %v1106_v45 = vmov 3   ;;  %v1107_v47 = vmov 4   ;;  %v1108_v48 = vmov 5  }
   0x2   :  { %v986_v4 = vpack.c.bf16 %v21_v1, %v20_v0  ;;  %v22_v5 = vld [vmem:[%s1494_s0 + $0x10] sm:$0xff]  ;;  %v23_v6 = vld [vmem:[%s1494_s0 + $0x18] sm:$0xff]  ;;  %v44_v8 = vld [vmem:[%s1495_s1] sm:$0xff]  ;;  %vm1110_vm3 = vmmov 0  }
   0x3   :  { %v992_v7 = vpack.c.bf16 %v23_v6, %v22_v5  ;;  %v24_v9 = vld [vmem:[%s1494_s0 + $0x20] sm:$0xff]  ;;  %v25_v10 = vld [vmem:[%s1494_s0 + $0x28] sm:$0xff]  ;;  %927 = vmatprep.mubr.msk.f32.mxu0 %vm92_vm0, %v44_v8  ;;  %v1185_v12 = vld [vmem:[%s1496_s4 + $0x10] sm:$0xff] }
   0x4   :  { %988 = vmatprep.subr.msk.bf16.mxu0 %vm1151_vm1, %v986_v4  ;;  %v1180_v11 = vld [vmem:[%s1496_s4] sm:$0xff]  ;;  %v998_v13 = vpack.c.bf16 %v25_v10, %v24_v9  ;;  %64 = vperm.xlu1 %1073, %v1185_v12   ;;  %v1192_v14 = vld [vmem:[%s1496_s4 + $0x8] sm:$0xff]  ;;  %v1197_v15 = vld [vmem:[%s1496_s4 + $0x18] sm:$0xff] }
   0x5   :  { %991 = vmatpush3.bf16.xpose.msk.msra.mxu0 %vm1151_vm1, %v986_v4  ;;  %54 = vperm.xlu0 %1072, %v1180_v11   ;;  %v26_v16 = vld [vmem:[%s1494_s0 + $0x30] sm:$0xff]  ;;  %v27_v17 = vld [vmem:[%s1494_s0 + $0x38] sm:$0xff]  ;;  %v1214_v18 = vld [vmem:[%s1496_s4 + $0x20] sm:$0xff] }
   0x6   :  { %994 = vmatprep.subr.msk.bf16.mxu0 %vm1151_vm1, %v992_v7  ;;  %v1219_v19 = vld [vmem:[%s1496_s4 + $0x28] sm:$0xff]  ;;  %v1004_v20 = vpack.c.bf16 %v27_v17, %v26_v16  ;;  %v1226_v21 = vld [vmem:[%s1496_s4 + $0x30] sm:$0xff]  ;;  %v1231_v22 = vld [vmem:[%s1496_s4 + $0x38] sm:$0xff] }
   0x7   :  { %v28_v23 = vld [vmem:[%s1494_s0 + $0x40] sm:$0xff]  ;;  %v29_v24 = vld [vmem:[%s1494_s0 + $0x48] sm:$0xff]  ;;  %v30_v27 = vld [vmem:[%s1494_s0 + $0x50] sm:$0xff] }
   0x8   :  { %69 = vperm.xlu1 %1073, %v1197_v15   ;;  %v1010_v25 = vpack.c.bf16 %v29_v24, %v28_v23  ;;  %v31_v28 = vld [vmem:[%s1494_s0 + $0x58] sm:$0xff]  ;;  %v32_v31 = vld [vmem:[%s1494_s0 + $0x60] sm:$0xff]  ;;  %v33_v32 = vld [vmem:[%s1494_s0 + $0x68] sm:$0xff] }
   0x9   :  { %59 = vperm.xlu0 %1072, %v1192_v14   ;;  %v1016_v30 = vpack.c.bf16 %v31_v28, %v30_v27  ;;  %v1022_v33 = vpack.c.bf16 %v33_v32, %v32_v31  ;;  %v34_v34 = vld [vmem:[%s1494_s0 + $0x70] sm:$0xff]  ;;  %v35_v35 = vld [vmem:[%s1494_s0 + $0x78] sm:$0xff]  ;;  %v45_v37 = vld [vmem:[%s1495_s1 + $0x8] sm:$0xff] }
   0xa   :  { %v1028_v36 = vpack.c.bf16 %v35_v35, %v34_v34  ;;  %v46_v38 = vld [vmem:[%s1495_s1 + $0x10] sm:$0xff]  ;;  %v47_v39 = vld [vmem:[%s1495_s1 + $0x18] sm:$0xff]  ;;  %v48_v40 = vld [vmem:[%s1495_s1 + $0x20] sm:$0xff] }
   0xb   :  { %v49_v41 = vld [vmem:[%s1495_s1 + $0x28] sm:$0xff]  ;;  %v50_v42 = vld [vmem:[%s1495_s1 + $0x30] sm:$0xff]  ;;  %v51_v43 = vld [vmem:[%s1495_s1 + $0x38] sm:$0xff] }
   0xc   :  { %79 = vperm.xlu1 %1073, %v1219_v19   ;;  %v415_v44 = vld [vmem:[%s1497_s2] sm:$0xff] }
   0xd   :  { %997 = vmatpush3.bf16.xpose.msk.msra.mxu0 %vm1151_vm1, %v992_v7  ;;  %74 = vperm.xlu0 %1072, %v1214_v18  }
   0xe   :  { %1000 = vmatprep.subr.msk.bf16.mxu0 %vm1151_vm1, %v998_v13  ;;  %955 = vmatprep.mubr.msk.f32.mxu1 %vm455_vm2, %v415_v44 }
  0x10   :  { %89 = vperm.xlu1 %1073, %v1231_v22  }
  0x11   :  { %84 = vperm.xlu0 %1072, %v1226_v21  }
  0x14   :  { %1075 = vset.pattern.permute.xlu1 %v1104_v26 }
  0x15   :  { %1003 = vmatpush3.bf16.xpose.msk.msra.mxu0 %vm1151_vm1, %v998_v13  ;;  %1074 = vset.pattern.permute.xlu0 %v1104_v26 }
  0x16   :  { %1006 = vmatprep.subr.msk.bf16.mxu0 %vm1151_vm1, %v1004_v20  ;;  %328 = vperm.xlu0 %1074, %v1180_v11  }
  0x17   :  { %332 = vperm.xlu1 %1075, %v1192_v14  }
  0x1a   :  { %344 = vperm.xlu0 %1074, %v1214_v18  }
  0x1b   :  { %1076 = vset.pattern.permute.xlu1 %v1105_v29 }
  0x1c   :  { %368 = vperm.xlu1 %1076, %v1180_v11  }
  0x1d   :  { %1009 = vmatpush3.bf16.xpose.msk.msra.mxu0 %vm1151_vm1, %v1004_v20 }
  0x1e   :  { %1012 = vmatprep.subr.msk.bf16.mxu0 %vm1151_vm1, %v1010_v25  ;;  %1079 = vset.pattern.permute.xlu0 %v1105_v29 }
  0x1f   :  { %372 = vperm.xlu0 %1079, %v1192_v14  }
  0x20   :  { %1077 = vset.pattern.permute.xlu1 %v1104_v26 }
  0x21   :  { %336 = vperm.xlu1 %1077, %v1185_v12  }
  0x23   :  { %376 = vperm.xlu0 %1079, %v1185_v12  }
  0x25   :  { %1015 = vmatpush3.bf16.xpose.msk.msra.mxu0 %vm1151_vm1, %v1010_v25  ;;  %340 = vperm.xlu1 %1077, %v1197_v15  }
  0x26   :  { %1018 = vmatprep.subr.msk.bf16.mxu0 %vm1151_vm1, %v1016_v30 }
  0x27   :  { %388 = vperm.xlu0 %1079, %v1219_v19  }
  0x29   :  { %1078 = vset.pattern.permute.xlu1 %v1105_v29 }
  0x2a   :  { %380 = vperm.xlu1 %1078, %v1197_v15  }
  0x2b   :  { %392 = vperm.xlu0 %1079, %v1226_v21  }
  0x2d   :  { %1021 = vmatpush3.bf16.xpose.msk.msra.mxu0 %vm1151_vm1, %v1016_v30 }
  0x2e   :  { %1024 = vmatprep.subr.msk.bf16.mxu0 %vm1151_vm1, %v1022_v33  ;;  %1080 = vset.pattern.permute.xlu1 %v1104_v26 }
  0x2f   :  { %348 = vperm.xlu1 %1080, %v1219_v19   ;;  %1084 = vset.pattern.permute.xlu0 %v1106_v45 }
  0x30   :  { %424 = vperm.xlu0 %1084, %v1180_v11  }
  0x33   :  { %1081 = vset.pattern.permute.xlu1 %v1105_v29 }
  0x34   :  { %384 = vperm.xlu1 %1081, %v1214_v18   ;;  %436 = vperm.xlu0 %1084, %v1197_v15  }
  0x35   :  { %1027 = vmatpush3.bf16.xpose.msk.msra.mxu0 %vm1151_vm1, %v1022_v33 }
  0x36   :  { %1030 = vmatprep.subr.msk.bf16.mxu0 %vm1151_vm1, %v1028_v36 }
  0x38   :  { %1082 = vset.pattern.permute.xlu1 %v1104_v26  ;;  %444 = vperm.xlu0 %1084, %v1219_v19  }
  0x39   :  { %352 = vperm.xlu1 %1082, %v1226_v21  }
  0x3c   :  { %452 = vperm.xlu0 %1084, %v1231_v22  }
  0x3d   :  { %1033 = vmatpush3.bf16.xpose.msk.msra.mxu0 %vm1151_vm1, %v1028_v36  ;;  %356 = vperm.xlu1 %1082, %v1231_v22  }
  0x40   :  { %1089 = vset.pattern.permute.xlu0 %v1108_v48 }
  0x41   :  { %1083 = vset.pattern.permute.xlu1 %v1105_v29  ;;  %691 = vperm.xlu0 %1089, %v1185_v12  }
  0x42   :  { %396 = vperm.xlu1 %1083, %v1231_v22  }
  0x44   :  { %928 = vmatmul.mubr.msk.f32.vlgmr.msra.gmra.mrb[0].mxu0 %vm92_vm0, %v45_v37 }
  0x45   :  { %930 = vmatprep.mubr.msk.f32.mxu0 %vm92_vm0, %v46_v38  ;;  %1090 = vset.pattern.permute.xlu0 %v1107_v47 }
  0x46   :  { %1085 = vset.pattern.permute.xlu1 %v1106_v45  ;;  %647 = vperm.xlu0 %1090, %v1192_v14  }
  0x47   :  { %428 = vperm.xlu1 %1085, %v1192_v14  }
  0x48   :  { %931 = vmatmul.mubr.msk.f32.gmra.mrb[2].mxu0 %vm92_vm0, %v47_v39 }
  0x49   :  { %933 = vmatprep.mubr.msk.f32.mxu0 %vm92_vm0, %v48_v40 }
  0x4a   :  { %651 = vperm.xlu0 %1090, %v1185_v12  }
  0x4b   :  { %432 = vperm.xlu1 %1085, %v1185_v12  }
  0x4c   :  { %934 = vmatmul.mubr.msk.f32.gmra.mrb[4].mxu0 %vm92_vm0, %v49_v41 }
  0x4d   :  { %936 = vmatprep.mubr.msk.f32.mxu0 %vm92_vm0, %v50_v42 }
  0x4e   :  { %663 = vperm.xlu0 %1090, %v1219_v19  }
  0x4f   :  { %440 = vperm.xlu1 %1085, %v1214_v18  }
  0x50   :  { %937 = vmatmul.mubr.msk.f32.gmra.mrb[6].mxu0 %vm92_vm0, %v51_v43 }
  0x52   :  { %667 = vperm.xlu0 %1090, %v1226_v21  }
  0x53   :  { %448 = vperm.xlu1 %1085, %v1226_v21  }
  0x56   :  { %1095 = vset.pattern.permute.xlu0 %v1108_v48 }
  0x57   :  { %1086 = vset.pattern.permute.xlu1 %v1107_v47  ;;  %707 = vperm.xlu0 %1095, %v1226_v21  }
  0x58   :  { %643 = vperm.xlu1 %1086, %v1180_v11  }
  0x5c   :  { %1087 = vset.pattern.permute.xlu1 %v1108_v48 }
  0x5d   :  { %683 = vperm.xlu1 %1087, %v1180_v11  }
  0x61   :  { %687 = vperm.xlu1 %1087, %v1192_v14  }
  0x65   :  { %1088 = vset.pattern.permute.xlu1 %v1107_v47 }
  0x66   :  { %655 = vperm.xlu1 %1088, %v1197_v15  }
  0x6a   :  { %1091 = vset.pattern.permute.xlu1 %v1108_v48 }
  0x6b   :  { %695 = vperm.xlu1 %1091, %v1197_v15  }
  0x6f   :  { %1092 = vset.pattern.permute.xlu1 %v1107_v47 }
  0x70   :  { %659 = vperm.xlu1 %1092, %v1214_v18  }
  0x74   :  { %1093 = vset.pattern.permute.xlu1 %v1108_v48 }
  0x75   :  { %699 = vperm.xlu1 %1093, %v1214_v18  }
  0x79   :  { %703 = vperm.xlu1 %1093, %v1219_v19  }
  0x7d   :  { %1094 = vset.pattern.permute.xlu1 %v1107_v47 }
  0x7e   :  { %671 = vperm.xlu1 %1094, %v1231_v22  }
  0x82   :  { %1096 = vset.pattern.permute.xlu1 %v1108_v48 }
  0x83   :  { %v65_v46 = vpop.permute.xlu1 %64  ;;  %711 = vperm.xlu1 %1096, %v1231_v22  }
  0x84   :  { %v55_v51 = vpop.permute.xlu0 %54 }
  0x87   :  { %v70_v49 = vpop.permute.xlu1 %69 }
  0x88   :  { %v60_v53 = vpop.permute.xlu0 %59 }
  0x8b   :  { %v80_v50 = vpop.permute.xlu1 %79 }
  0x8c   :  { %v75_v0 = vpop.permute.xlu0 %74 }
  0x8f   :  { %v90_v52 = vpop.permute.xlu1 %89 }
  0x90   :  { %v85_v15 = vpop.permute.xlu0 %84 }
  0x95   :  { %v329_v42 = vpop.permute.xlu0 %328 }
  0x96   :  { %v1354_v57 = vpop.permute.xlu1 %332 }
  0x9b   :  { %v1373_v4 = vpop.permute.xlu1 %368 }
  0xa0   :  { %v1392_v25 = vpop.permute.xlu1 %336 }
  0xa4   :  { %v341_v35 = vpop.permute.xlu1 %340 }
  0xa9   :  { %v381_v19 = vpop.permute.xlu1 %380 }
 0x117   :  { %v929_v54 = vpop.f32.mrb[0].mxu0 }
 0x118   :  { %v1352_v55 = vadd.f32 %v929_v54, %v60_v53  ;;  %v231_v56 = vpop.f32.mrb[1].mxu0 }
 0x119   :  { %v1357_v58 = vadd.f32 %v231_v56, %v55_v51  ;;  %v345_v51 = vpop.permute.xlu0 %344 }
 0x11a   :  { %v284_v59 = vmul.f32 %v1352_v55, %v1352_v55 }
 0x11b   :  { %v270_v60 = vadd.f32 %v1352_v55, %v1357_v58  ;;  %v283_v61 = vmul.f32 %v1357_v58, %v1357_v58  ;;  %v932_v62 = vpop.f32.mrb[2].mxu0 }
 0x11c   :  { %v241_v63 = vpop.f32.mrb[3].mxu0  ;;  %v1368_v2 = vadd.f32 %v932_v62, %v70_v49 }
 0x11d   :  { %v291_v1 = vadd.f32 %v284_v59, %v283_v61  ;;  %v1370_v3 = vadd.f32 %v241_v63, %v65_v46 }
 0x11e   :  { %v286_v10 = vmul.f32 %v1368_v2, %v1368_v2 }
 0x11f   :  { %v271_v5 = vadd.f32 %v270_v60, %v1370_v3  ;;  %v285_v6 = vmul.f32 %v1370_v3, %v1370_v3  ;;  %v935_v7 = vpop.f32.mrb[4].mxu0 }
 0x120   :  { %v1378_v8 = vadd.f32 %v935_v7, %v80_v50  ;;  %v251_v9 = vpop.f32.mrb[5].mxu0  ;;  %v349_v50 = vpop.permute.xlu1 %348 }
 0x121   :  { %v292_v12 = vadd.f32 %v291_v1, %v285_v6  ;;  %v1382_v13 = vadd.f32 %v251_v9, %v75_v0  ;;  %v272_v14 = vadd.f32 %v271_v5, %v1368_v2  ;;  %v373_v6 = vpop.permute.xlu0 %372 }
 0x122   :  { %v288_v23 = vmul.f32 %v1378_v8, %v1378_v8 }
 0x123   :  { %v273_v16 = vadd.f32 %v272_v14, %v1382_v13  ;;  %v287_v17 = vmul.f32 %v1382_v13, %v1382_v13  ;;  %v293_v20 = vadd.f32 %v292_v12, %v286_v10  ;;  %v938_v21 = vpop.f32.mrb[6].mxu0 }
 0x124   :  { %v261_v24 = vpop.f32.mrb[7].mxu0  ;;  %v267_v27 = vadd.f32 %v938_v21, %v90_v52  ;;  %v385_v5 = vpop.permute.xlu1 %384 }
 0x125   :  { %v294_v26 = vadd.f32 %v293_v20, %v287_v17  ;;  %v262_v28 = vadd.f32 %v261_v24, %v85_v15  ;;  %v274_v29 = vadd.f32 %v273_v16, %v1378_v8 }
 0x126   :  { %v290_v32 = vmul.f32 %v267_v27, %v267_v27 }
 0x127   :  { %v275_v18 = vadd.f32 %v274_v29, %v262_v28  ;;  %v289_v30 = vmul.f32 %v262_v28, %v262_v28  ;;  %v295_v31 = vadd.f32 %v294_v26, %v288_v23 }
 0x128   :  { %v353_v10 = vpop.permute.xlu1 %352 }
 0x129   :  { %v276_v33 = vadd.f32 %v275_v18, %v267_v27  ;;  %v296_v34 = vadd.f32 %v295_v31, %v289_v30 }
 0x12b   :  { %v277_v36 = vrot.slane %v276_v33, 4  ;;  %v297_v37 = vadd.f32 %v296_v34, %v290_v32 }
 0x12c   :  { %v357_v12 = vpop.permute.xlu1 %356 }
 0x12d   :  { %v278_v38 = vadd.f32 %v277_v36, %v276_v33  ;;  %v298_v39 = vrot.slane %v297_v37, 4 }
 0x12f   :  { %v279_v40 = vrot.slane %v278_v38, 2  ;;  %v299_v41 = vadd.f32 %v298_v39, %v297_v37 }
 0x131   :  { %v280_v43 = vadd.f32 %v279_v40, %v278_v38  ;;  %v300_v44 = vrot.slane %v299_v41, 2 }
 0x133   :  { %v281_v45 = vrot.slane %v280_v43, 1  ;;  %v301_v46 = vadd.f32 %v300_v44, %v299_v41 }
 0x135   :  { %v282_v49 = vadd.f32 %v281_v45, %v280_v43  ;;  %v302_v47 = vrot.slane %v301_v46, 1 }
 0x137   :  { %v303_v52 = vadd.f32 %v302_v47, %v301_v46  ;;  %v304_v53 = vmul.f32 0.015625, %v282_v49 }
 0x139   :  { %v305_v54 = vmul.f32 0.015625, %v303_v52  ;;  %v306_v56 = vmul.f32 %v304_v53, %v304_v53  ;;  %v312_v59 = vsub.f32 %v1352_v55, %v304_v53  ;;  %v313_v48 = vsub.f32 %v1370_v3, %v304_v53  ;;  %v377_v55 = vpop.permute.xlu0 %376  ;;  %v419_v52 = vld [vmem:[%s1497_s2 + $0x20] sm:$0xff] }
 0x13a   :  { %v314_v60 = vsub.f32 %v1368_v2, %v304_v53  ;;  %v311_v22 = vsub.f32 %v1357_v58, %v304_v53  ;;  %v316_v61 = vsub.f32 %v1378_v8, %v304_v53  ;;  %v315_v62 = vsub.f32 %v1382_v13, %v304_v53 }
 0x13b   :  { %v307_v63 = vsub.f32 %v305_v54, %v306_v56  ;;  %v317_v0 = vsub.f32 %v262_v28, %v304_v53  ;;  %v318_v1 = vsub.f32 %v267_v27, %v304_v53  ;;  %v397_v27 = vpop.permute.xlu1 %396  ;;  %v420_v53 = vld [vmem:[%s1497_s2 + $0x28] sm:$0xff]  ;;  %v421_v54 = vld [vmem:[%s1497_s2 + $0x30] sm:$0xff]  ;;  %v422_v56 = vld [vmem:[%s1497_s2 + $0x38] sm:$0xff] }
 0x13d   :  { %v308_v7 = vmax.f32 %v307_v63, 0.0  ;;  %v389_v3 = vpop.permute.xlu0 %388 }
 0x13f   :  { %v309_v9 = vadd.f32 1e-05, %v308_v7 }
 0x141   :  { %1099 = vrsqrt.f32 %v309_v9  ;;  %v393_v28 = vpop.permute.xlu0 %392 }
 0x145   :  { %v425_v63 = vpop.permute.xlu0 %424 }
 0x14b   :  { %v1100_v14 = vpop.eup %1099 }
 0x14c   :  { %v320_v2 = vmul.f32 %v1100_v14, %v312_v59  ;;  %v321_v15 = vmul.f32 %v1100_v14, %v313_v48  ;;  %v322_v58 = vmul.f32 %v1100_v14, %v314_v60  ;;  %v319_v16 = vmul.f32 %v1100_v14, %v311_v22  ;;  %v429_v22 = vpop.permute.xlu1 %428 }
 0x14d   :  { %v324_v8 = vmul.f32 %v1100_v14, %v316_v61  ;;  %v323_v17 = vmul.f32 %v1100_v14, %v315_v62  ;;  %v325_v13 = vmul.f32 %v1100_v14, %v317_v0  ;;  %v326_v20 = vmul.f32 %v1100_v14, %v318_v1  ;;  %v437_v1 = vpop.permute.xlu0 %436 }
 0x14e   :  { %v360_v21 = vmul.f32 %v1354_v57, %v320_v2  ;;  %v361_v23 = vmul.f32 %v1392_v25, %v321_v15  ;;  %v362_v24 = vmul.f32 %v341_v35, %v322_v58  ;;  %v359_v26 = vmul.f32 %v329_v42, %v319_v16 }
 0x14f   :  { %v364_v29 = vmul.f32 %v349_v50, %v324_v8  ;;  %v363_v18 = vmul.f32 %v345_v51, %v323_v17  ;;  %v365_v30 = vmul.f32 %v353_v10, %v325_v13  ;;  %v366_v31 = vmul.f32 %v357_v12, %v326_v20  ;;  %v417_v50 = vld [vmem:[%s1497_s2 + $0x10] sm:$0xff]  ;;  %v418_v51 = vld [vmem:[%s1497_s2 + $0x18] sm:$0xff] }
 0x150   :  { %v402_v32 = vadd.f32 %v381_v19, %v362_v24  ;;  %v399_v33 = vadd.f32 %v1373_v4, %v359_v26  ;;  %v400_v34 = vadd.f32 %v373_v6, %v360_v21  ;;  %v401_v36 = vadd.f32 %v377_v55, %v361_v23  ;;  %v416_v4 = vld [vmem:[%s1497_s2 + $0x8] sm:$0xff]  ;;  %v433_v61 = vpop.permute.xlu1 %432 }
 0x151   :  { %v403_v37 = vadd.f32 %v385_v5, %v363_v18  ;;  %v404_v38 = vadd.f32 %v389_v3, %v364_v29  ;;  %v406_v39 = vadd.f32 %v397_v27, %v366_v31  ;;  %v405_v40 = vadd.f32 %v393_v28, %v365_v30  ;;  %v445_v2 = vpop.permute.xlu0 %444 }
 0x152   :  { %v410_v57 = vmax.f32 %v402_v32, 0.0  ;;  %v407_v41 = vmax.f32 %v399_v33, 0.0  ;;  %v408_v25 = vmax.f32 %v400_v34, 0.0  ;;  %v409_v35 = vmax.f32 %v401_v36, 0.0 }
 0x153   :  { %v411_v42 = vmax.f32 %v403_v37, 0.0  ;;  %v412_v43 = vmax.f32 %v404_v38, 0.0  ;;  %v414_v44 = vmax.f32 %v406_v39, 0.0  ;;  %v413_v45 = vmax.f32 %v405_v40, 0.0 }
 0x154   :  { %v1038_v46 = vpack.c.bf16 %v410_v57, %v409_v35  ;;  %v1034_v49 = vpack.c.bf16 %v408_v25, %v407_v41  ;;  %v1109_v59 = vmov 0.0|0.0   ;;  %v1111_v48 = vmov 0.0   ;;  %v441_v62 = vpop.permute.xlu1 %440 }
 0x155   :  { %v1042_v47 = vpack.c.bf16 %v412_v43, %v411_v42  ;;  %v1046_v19 = vpack.c.bf16 %v414_v44, %v413_v45  ;;  %v1112_v60 = vmov 6   ;;  %v453_v29 = vpop.permute.xlu0 %452 }
 0x156   :  { %1035 = vmatprep.subr.bf16.mxu1 %v1034_v49  ;;  %1097 = vset.pattern.permute.xlu1 %v1112_v60 }
 0x157   :  { %1037 = vmatpush3.bf16.msra.mxu1 %v1034_v49  ;;  %1098 = vset.pattern.permute.xlu0 %v1112_v60 }
 0x158   :  { %1039 = vmatprep.subr.bf16.mxu1 %v1038_v46  ;;  %732 = vperm.xlu1 %1097, %v1180_v11   ;;  %v449_v0 = vpop.permute.xlu1 %448 }
 0x15b   :  { %1041 = vmatpush3.bf16.msra.mxu1 %v1038_v46 }
 0x15c   :  { %1043 = vmatprep.subr.bf16.mxu1 %v1042_v47  ;;  %v1441_v9 = vpop.permute.xlu1 %643 }
 0x15f   :  { %1045 = vmatpush3.bf16.msra.mxu1 %v1042_v47 }
 0x160   :  { %1047 = vmatprep.subr.bf16.mxu1 %v1046_v19  ;;  %v1455_v8 = vpop.permute.xlu1 %683 }
 0x163   :  { %1049 = vmatpush3.bf16.msra.mxu1 %v1046_v19 }
 0x164   :  { %1050 = vmatprep.subr.bf16.mxu1 %v1109_v59  ;;  %v1472_v36 = vpop.permute.xlu1 %687 }
 0x166   :  { %956 = vmatmul.mubr.msk.f32.vlgmr.msra.gmra.mrb[0].mxu1 %vm455_vm2, %v416_v4 }
 0x167   :  { %958 = vmatprep.mubr.msk.f32.mxu1 %vm455_vm2, %v417_v50  ;;  %v692_v50 = vpop.permute.xlu0 %691 }
 0x168   :  { %v656_v44 = vpop.permute.xlu1 %655 }
 0x16a   :  { %959 = vmatmul.mubr.msk.f32.gmra.mrb[2].mxu1 %vm455_vm2, %v418_v51 }
 0x16b   :  { %961 = vmatprep.mubr.msk.f32.mxu1 %vm455_vm2, %v419_v52 }
 0x16c   :  { %v696_v51 = vpop.permute.xlu1 %695 }
 0x16e   :  { %962 = vmatmul.mubr.msk.f32.gmra.mrb[4].mxu1 %vm455_vm2, %v420_v53 }
 0x16f   :  { %964 = vmatprep.mubr.msk.f32.mxu1 %vm455_vm2, %v421_v54 }
 0x172   :  { %965 = vmatmul.mubr.msk.f32.gmra.mrb[6].mxu1 %vm455_vm2, %v422_v56 }
 0x173   :  { %983 = vmatprep.mubr.msk.f32.mxu1 %vm1110_vm3, %v1111_v48 }
 0x239   :  { %v957_v5 = vpop.f32.mrb[0].mxu1 }
 0x23a   :  { %v1439_v6 = vadd.f32 %v957_v5, %v429_v22  ;;  %v546_v7 = vpop.f32.mrb[1].mxu1  ;;  %v648_v22 = vpop.permute.xlu0 %647 }
 0x23b   :  { %v1443_v10 = vadd.f32 %v546_v7, %v425_v63 }
 0x23c   :  { %v599_v55 = vmul.f32 %v1439_v6, %v1439_v6 }
 0x23d   :  { %v585_v11 = vadd.f32 %v1439_v6, %v1443_v10  ;;  %v598_v12 = vmul.f32 %v1443_v10, %v1443_v10  ;;  %v960_v3 = vpop.f32.mrb[2].mxu1 }
 0x23e   :  { %v556_v14 = vpop.f32.mrb[3].mxu1  ;;  %v1451_v58 = vadd.f32 %v960_v3, %v437_v1 }
 0x23f   :  { %v606_v15 = vadd.f32 %v599_v55, %v598_v12  ;;  %v1453_v16 = vadd.f32 %v556_v14, %v433_v61  ;;  %v660_v61 = vpop.permute.xlu1 %659 }
 0x240   :  { %v601_v24 = vmul.f32 %v1451_v58, %v1451_v58 }
 0x241   :  { %v586_v17 = vadd.f32 %v585_v11, %v1453_v16  ;;  %v600_v13 = vmul.f32 %v1453_v16, %v1453_v16  ;;  %v963_v20 = vpop.f32.mrb[4].mxu1 }
 0x242   :  { %v1460_v21 = vadd.f32 %v963_v20, %v445_v2  ;;  %v566_v23 = vpop.f32.mrb[5].mxu1 }
 0x243   :  { %v607_v26 = vadd.f32 %v606_v15, %v600_v13  ;;  %v1464_v27 = vadd.f32 %v566_v23, %v441_v62  ;;  %v587_v28 = vadd.f32 %v586_v17, %v1451_v58  ;;  %v652_v17 = vpop.permute.xlu0 %651  ;;  %v700_v13 = vpop.permute.xlu1 %699 }
 0x244   :  { %v603_v33 = vmul.f32 %v1460_v21, %v1460_v21 }
 0x245   :  { %v588_v18 = vadd.f32 %v587_v28, %v1464_v27  ;;  %v602_v30 = vmul.f32 %v1464_v27, %v1464_v27  ;;  %v608_v31 = vadd.f32 %v607_v26, %v601_v24  ;;  %v966_v32 = vpop.f32.mrb[6].mxu1 }
 0x246   :  { %v576_v34 = vpop.f32.mrb[7].mxu1  ;;  %v582_v38 = vadd.f32 %v966_v32, %v453_v29 }
 0x247   :  { %v609_v37 = vadd.f32 %v608_v31, %v602_v30  ;;  %v577_v39 = vadd.f32 %v576_v34, %v449_v0  ;;  %v589_v40 = vadd.f32 %v588_v18, %v1460_v21  ;;  %v664_v24 = vpop.permute.xlu0 %663 }
 0x248   :  { %v605_v35 = vmul.f32 %v582_v38, %v582_v38 }
 0x249   :  { %v590_v57 = vadd.f32 %v589_v40, %v577_v39  ;;  %v604_v41 = vmul.f32 %v577_v39, %v577_v39  ;;  %v610_v25 = vadd.f32 %v609_v37, %v603_v33 }
 0x24b   :  { %v591_v42 = vadd.f32 %v590_v57, %v582_v38  ;;  %v611_v43 = vadd.f32 %v610_v25, %v604_v41  ;;  %v668_v26 = vpop.permute.xlu0 %667 }
 0x24d   :  { %v592_v45 = vrot.slane %v591_v42, 4  ;;  %v612_v46 = vadd.f32 %v611_v43, %v605_v35 }
 0x24f   :  { %v593_v49 = vadd.f32 %v592_v45, %v591_v42  ;;  %v613_v47 = vrot.slane %v612_v46, 4 }
 0x251   :  { %v594_v19 = vrot.slane %v593_v49, 2  ;;  %v614_v4 = vadd.f32 %v613_v47, %v612_v46 }
 0x253   :  { %v595_v52 = vadd.f32 %v594_v19, %v593_v49  ;;  %v615_v53 = vrot.slane %v614_v4, 2 }
 0x255   :  { %v596_v54 = vrot.slane %v595_v52, 1  ;;  %v616_v56 = vadd.f32 %v615_v53, %v614_v4 }
 0x257   :  { %v597_v48 = vadd.f32 %v596_v54, %v595_v52  ;;  %v617_v60 = vrot.slane %v616_v56, 1 }
 0x259   :  { %v618_v62 = vadd.f32 %v617_v60, %v616_v56  ;;  %v619_v63 = vmul.f32 0.015625, %v597_v48 }
 0x25b   :  { %v620_v0 = vmul.f32 0.015625, %v618_v62  ;;  %v621_v1 = vmul.f32 %v619_v63, %v619_v63  ;;  %v626_v5 = vsub.f32 %v1443_v10, %v619_v63  ;;  %v629_v7 = vsub.f32 %v1451_v58, %v619_v63  ;;  %v704_v10 = vpop.permute.xlu1 %703 }
 0x25c   :  { %v627_v55 = vsub.f32 %v1439_v6, %v619_v63  ;;  %v630_v11 = vsub.f32 %v1464_v27, %v619_v63  ;;  %v628_v12 = vsub.f32 %v1453_v16, %v619_v63  ;;  %v631_v3 = vsub.f32 %v1460_v21, %v619_v63 }
 0x25d   :  { %v622_v14 = vsub.f32 %v620_v0, %v621_v1  ;;  %v632_v2 = vsub.f32 %v577_v39, %v619_v63  ;;  %v633_v15 = vsub.f32 %v582_v38, %v619_v63  ;;  %v708_v39 = vpop.permute.xlu0 %707 }
 0x25f   :  { %v623_v20 = vmax.f32 %v622_v14, 0.0  ;;  %v672_v58 = vpop.permute.xlu1 %671 }
 0x261   :  { %v624_v23 = vadd.f32 1e-05, %v623_v20 }
 0x263   :  { %1101 = vrsqrt.f32 %v624_v23  ;;  %v712_v38 = vpop.permute.xlu1 %711 }
 0x26d   :  { %v1102_v28 = vpop.eup %1101 }
 0x26e   :  { %v634_v6 = vmul.f32 %v1102_v28, %v626_v5  ;;  %v637_v29 = vmul.f32 %v1102_v28, %v629_v7  ;;  %v635_v27 = vmul.f32 %v1102_v28, %v627_v55  ;;  %v638_v18 = vmul.f32 %v1102_v28, %v630_v11 }
 0x26f   :  { %v636_v16 = vmul.f32 %v1102_v28, %v628_v12  ;;  %v639_v30 = vmul.f32 %v1102_v28, %v631_v3  ;;  %v640_v21 = vmul.f32 %v1102_v28, %v632_v2  ;;  %v641_v31 = vmul.f32 %v1102_v28, %v633_v15 }
 0x270   :  { %v674_v32 = vmul.f32 %v1441_v9, %v634_v6  ;;  %v677_v33 = vmul.f32 %v656_v44, %v637_v29  ;;  %v675_v34 = vmul.f32 %v648_v22, %v635_v27  ;;  %v678_v37 = vmul.f32 %v660_v61, %v638_v18 }
 0x271   :  { %v676_v40 = vmul.f32 %v652_v17, %v636_v16  ;;  %v679_v57 = vmul.f32 %v664_v24, %v639_v30  ;;  %v680_v41 = vmul.f32 %v668_v26, %v640_v21  ;;  %v681_v25 = vmul.f32 %v672_v58, %v641_v31 }
 0x272   :  { %v714_v35 = vadd.f32 %v1455_v8, %v674_v32  ;;  %v717_v42 = vadd.f32 %v696_v51, %v677_v33  ;;  %v715_v43 = vadd.f32 %v1472_v36, %v675_v34  ;;  %v718_v45 = vadd.f32 %v700_v13, %v678_v37  ;;  %v730_v36 = vld [vmem:[%s1498_s3] sm:$0xf] }
 0x273   :  { %v716_v46 = vadd.f32 %v692_v50, %v676_v40  ;;  %v719_v49 = vadd.f32 %v704_v10, %v679_v57  ;;  %v721_v47 = vadd.f32 %v712_v38, %v681_v25  ;;  %v720_v19 = vadd.f32 %v708_v39, %v680_v41  ;;  %v733_v50 = vpop.permute.xlu1 %732 }
 0x274   :  { %v722_v9 = vmax.f32 %v714_v35, 0.0  ;;  %v725_v44 = vmax.f32 %v717_v42, 0.0  ;;  %v723_v4 = vmax.f32 %v715_v43, 0.0  ;;  %v726_v52 = vmax.f32 %v718_v45, 0.0 }
 0x275   :  { %v724_v53 = vmax.f32 %v716_v46, 0.0  ;;  %v727_v54 = vmax.f32 %v719_v49, 0.0  ;;  %v729_v56 = vmax.f32 %v721_v47, 0.0  ;;  %v728_v48 = vmax.f32 %v720_v19, 0.0 }
 0x276   :  { %v1051_v60 = vpack.c.bf16 %v723_v4, %v722_v9 }
 0x277   :  { %v1054_v22 = vpack.c.bf16 %v725_v44, %v724_v53  ;;  %v1057_v61 = vpack.c.bf16 %v727_v54, %v726_v52  ;;  %v1060_v8 = vpack.c.bf16 %v729_v56, %v728_v48 }
 0x278   :  { %1052 = vmatpush3.bf16.msra.mxu1 %v1051_v60 }
 0x279   :  { %1053 = vmatprep.subr.bf16.mxu1 %v1109_v59 }
 0x27c   :  { %1055 = vmatpush3.bf16.msra.mxu1 %v1054_v22 }
 0x27d   :  { %1056 = vmatprep.subr.bf16.mxu1 %v1109_v59 }
 0x280   :  { %1058 = vmatpush3.bf16.msra.mxu1 %v1057_v61 }
 0x281   :  { %1059 = vmatprep.subr.bf16.mxu1 %v1109_v59 }
 0x284   :  { %1061 = vmatpush3.bf16.msra.mxu1 %v1060_v8 }
 0x287   :  { %984 = vmatmul.mubr.msk.f32.vlgmr.msra.gmra.mrb[8].mxu1 %vm455_vm2, %v730_v36 }
 0x35a   :  { %v804_v51 = vpop.f32.mrb[8].mxu1 }
 0x35b   :  { %v805_v62 = vadd.f32 %v804_v51, %v733_v50  ;;  %v985_v63 = vpop.f32.mrb[9].mxu1 }
 0x35d   :  { %808 = vst [vmem:[%s1499_s5] sm:$0xf] %v805_v62 }

</bundles_post_ra>
